<compile_context>
chip_gen: v5e
topology: v5e:2x2
jax: 0.10.0
libtpu: 0.0.40
codegen_flags: <defaults>
</compile_context>

<pallas_src>
import functools

import jax
import jax.numpy as jnp
from jax import lax
from jax.experimental import pallas as pl
from jax.experimental.pallas import tpu as pltpu


def _lstm_heads_kernel(x_ref, w_lstm_ref, w_head_ref, w_cls3_ref, bias_ref,
                       reg_out_ref, cla_out_ref,
                       buf_ref, proj_ref, *, S, N):
    R = x_ref.shape[1]
    G = 4 * R
    L = w_lstm_ref.shape[0]
    SEM = w_head_ref.shape[1] - 2 * R
    CLS = w_cls3_ref.shape[1]

    # Static lane offsets into the single f32 bias/vector slab:
    #   [ lstm biases (L*G) | rb1 (R) | cb1 (R) | rb2 (SEM) | cw2 (R) | cb2 (1) | cb3 (CLS) ]
    off_bh1 = L * G
    off_rb2 = off_bh1 + 2 * R
    off_cw2 = off_rb2 + SEM
    off_cb2 = off_cw2 + R
    off_cb3 = off_cb2 + 1

    for l in range(L):                         # layers: tiny static loop
        w_l = w_lstm_ref[l]                    # (2R, 4R) bf16, gate order (i, f, o, g)
        wih = w_l[:R]                          # (R, 4R)
        whh = w_l[R:]                          # (R, 4R)
        bb = bias_ref[:, l * G:(l + 1) * G]    # (1, 4R) f32 (b_ih + b_hh)

        # ---- Hoisted input projection: one (S*N, R) @ (R, 4R) matmul per layer.
        xin = x_ref[...].astype(jnp.bfloat16) if l == 0 else buf_ref[...]
        proj_ref[...] = jnp.dot(xin, wih, preferred_element_type=jnp.float32) + bb

        def apply_step(idx, hb, c):
            # Single fused, lane-dense (N, 4R) preactivation per step.
            pre = (proj_ref[idx, :]
                   + jnp.dot(hb, whh, preferred_element_type=jnp.float32))
            # Full-vreg EUP pushes (4R == 128 lanes); slice gates afterwards.
            sig = jax.nn.sigmoid(pre)          # f32 (v5e-safe elementwise)
            tg = jnp.tanh(pre)
            c = sig[:, R:2 * R] * c + sig[:, :R] * tg[:, 3 * R:]   # f*c + i*g
            h = sig[:, 2 * R:3 * R] * jnp.tanh(c)                  # o * tanh(c)
            hb = h.astype(jnp.bfloat16)
            buf_ref[idx, :] = hb               # in-place safe: layer already projected
            return hb, c

        hb = jnp.zeros((N, R), jnp.bfloat16)   # recurrent state carried as bf16 (MXU input)
        c = jnp.zeros((N, R), jnp.float32)     # cell state stays f32
        if S <= 8:
            # Fully static unroll: static, aligned row slices into buf/proj.
            for t in range(S):
                hb, c = apply_step(slice(t * N, (t + 1) * N), hb, c)
        else:
            def fori_body(t, carry):
                row0 = pl.multiple_of(t * N, N)
                return apply_step(pl.ds(row0, N), carry[0], carry[1])
            lax.fori_loop(0, S, fori_body, (hb, c), unroll=4)

    # ---- Heads on the final LSTM output (bf16, flat (S*N, R)) ----
    y = buf_ref[...]
    w_head = w_head_ref[...]                   # (R, 2R + SEM) bf16 = [rw1 | cw1 | rw2]
    bh1 = bias_ref[:, off_bh1:off_rb2]         # (1, 2R) = [rb1 | cb1]

    # Fused first projections (shared LHS y): Linear(R,R) -> ReLU, for both heads.
    h1c1 = jnp.maximum(
        jnp.dot(y, w_head[:, :2 * R], preferred_element_type=jnp.float32) + bh1, 0.0)
    # Dropout(p=0.1) is identity in eval mode.

    # Regressor head: Linear(R, semantic)
    rb2 = bias_ref[:, off_rb2:off_cw2]
    logits1 = (jnp.dot(h1c1[:, :R].astype(jnp.bfloat16), w_head[:, 2 * R:],
                       preferred_element_type=jnp.float32) + rb2)        # (S*N, SEM)
    reg_out_ref[...] = logits1

    # Classifier head: Linear(R,1) as a VPU reduction -> Transpose(-1,-2)
    #                  -> Linear(time_points, classes) -> softmax(dim=0)
    cw2 = bias_ref[:, off_cw2:off_cb2]         # (1, R)
    cb2 = bias_ref[:, off_cb2:off_cb3]         # (1, 1)
    c2 = jnp.sum(h1c1[:, R:].reshape(S, N, R) * cw2, axis=-1) + cb2      # (S, N)
    # (S, N, 1) --Transpose(-1,-2)--> (S, 1, N): middle dim is 1, so this is just (S, N).
    cb3 = bias_ref[:, off_cb3:off_cb3 + CLS]
    logits2 = (jnp.dot(c2.astype(jnp.bfloat16), w_cls3_ref[...],
                       preferred_element_type=jnp.float32) + cb3)        # (S, CLS)
    # F.softmax with no dim on a 3-D tensor => dim=0 in PyTorch.
    m = jnp.max(logits2, axis=0, keepdims=True)
    e = jnp.exp(logits2 - m)
    cla_out_ref[...] = e / jnp.sum(e, axis=0, keepdims=True)


def lstm_forward(x, kparams, *, semantic, classes):
    """x: (S, N, R) f32.  kparams: output of pack_params_for_kernel."""
    S, N, R = x.shape
    w_lstm, w_head, w_cls3, biases = kparams
    L = w_lstm.shape[0]
    G = 4 * R

    x2 = x.reshape(S * N, R)                   # metadata-only reshape outside the kernel

    # Advisory cost estimate (recurrence + hoisted projections + heads).
    lstm_flops = 4 * L * S * N * R * G
    head_flops = 2 * S * N * R * (2 * R + semantic) + 2 * S * N * R + 2 * S * N * classes
    transcend = L * S * N * (2 * G + R) + S * classes
    all_args = (x2, w_lstm, w_head, w_cls3, biases)
    bytes_in = sum(a.size * a.dtype.itemsize for a in all_args)
    bytes_out = (S * N * semantic + S * classes) * 4
    cost = pl.CostEstimate(flops=lstm_flops + head_flops,
                           transcendentals=transcend,
                           bytes_accessed=bytes_in + bytes_out)

    vmem = pl.BlockSpec(memory_space=pltpu.MemorySpace.VMEM)
    reg_out, cla_out = pl.pallas_call(
        functools.partial(_lstm_heads_kernel, S=S, N=N),
        out_shape=(
            jax.ShapeDtypeStruct((S * N, semantic), jnp.float32),
            jax.ShapeDtypeStruct((S, classes), jnp.float32),
        ),
        in_specs=[vmem] * 5,
        out_specs=(vmem, vmem),
        scratch_shapes=[
            pltpu.VMEM((S * N, R), jnp.bfloat16),   # flat layer output buffer (bf16)
            pltpu.VMEM((S * N, G), jnp.float32),    # flat hoisted input projection
        ],
        compiler_params=pltpu.CompilerParams(vmem_limit_bytes=32 * 1024 * 1024),
        cost_estimate=cost,
    )(x2, w_lstm, w_head, w_cls3, biases)
    # Metadata-only reshapes back to the module's shapes; return order (logits2, logits1).
    return cla_out.reshape(S, 1, classes), reg_out.reshape(S, N, semantic)


def pack_params_for_kernel(params):
    """Pack the 13 raw parameters into 4 contiguous slabs:
       - bf16 LSTM weights (L, 2R, 4R) = [W_ih ; W_hh], gate order (i, f, o, g)
       - bf16 head weights (R, 2R + semantic) = [rw1 | cw1 | rw2]
       - bf16 classifier final weight (T, classes)
       - one f32 row holding every bias / vector (incl. cw2 for the VPU reduce)."""
    (wih, whh, b, rw1, rb1, rw2, rb2, cw1, cb1, cw2, cb2, cw3, cb3) = params
    perm = jnp.array([0, 1, 3, 2])             # (i, f, g, o) -> (i, f, o, g)

    def fuse(w):                               # (L, 4, A, R) -> (L, A, 4R)
        wp = w[:, perm]
        return jnp.concatenate([wp[:, g] for g in range(4)], axis=-1)

    wih_f, whh_f, b_f = fuse(wih), fuse(whh), fuse(b)
    L, _, G = b_f.shape

    w_lstm = jnp.concatenate([wih_f, whh_f], axis=1).astype(jnp.bfloat16)   # (L, 2R, 4R)
    w_head = jnp.concatenate([rw1, cw1, rw2], axis=1).astype(jnp.bfloat16)  # (R, 2R+SEM)
    w_cls3 = cw3.astype(jnp.bfloat16)                                       # (T, CLS)
    biases = jnp.concatenate(
        [b_f.reshape(1, L * G), rb1, cb1, rb2, cw2.reshape(1, -1), cb2, cb3],
        axis=1).astype(jnp.float32)                                         # (1, TOT)
    return (w_lstm, w_head, w_cls3, biases)


def reference_forward(x, params):
    """Pure-JAX f32 reference with identical semantics (for verification)."""
    (wih, whh, b, rw1, rb1, rw2, rb2, cw1, cb1, cw2, cb2, cw3, cb3) = params
    S, N, R = x.shape
    L = wih.shape[0]
    y = x.astype(jnp.float32)
    for l in range(L):
        h = jnp.zeros((N, R), jnp.float32)
        c = jnp.zeros((N, R), jnp.float32)
        outs = []
        for t in range(S):
            xt = y[t]
            lin = lambda g: xt @ wih[l, g] + h @ whh[l, g] + b[l, g]
            i_g = jax.nn.sigmoid(lin(0))
            f_g = jax.nn.sigmoid(lin(1))
            g_g = jnp.tanh(lin(2))
            o_g = jax.nn.sigmoid(lin(3))
            c = f_g * c + i_g * g_g
            h = o_g * jnp.tanh(c)
            outs.append(h)
        y = jnp.stack(outs, axis=0)
    y2 = y.reshape(S * N, R)
    h1 = jnp.maximum(y2 @ rw1 + rb1, 0.0)
    logits1 = (h1 @ rw2 + rb2).reshape(S, N, -1)
    c1 = jnp.maximum(y2 @ cw1 + cb1, 0.0)
    c2 = (c1 @ cw2 + cb2).reshape(S, N)
    logits2 = c2 @ cw3 + cb3
    probs = jax.nn.softmax(logits2, axis=0).reshape(S, 1, -1)
    return probs, logits1


def make_params(key, *, regions, lstm_layers, time_points, semantic, classes):
    R, L, T = regions, lstm_layers, time_points
    bound = 1.0 / jnp.sqrt(R)
    ks = jax.random.split(key, 12)
    u = lambda k, shp, bd: jax.random.uniform(k, shp, jnp.float32, -bd, bd)
    # LSTM weights stored pre-transposed: [layer, gate(i,f,g,o), in_features, hidden]
    wih = u(ks[0], (L, 4, R, R), bound)
    whh = u(ks[1], (L, 4, R, R), bound)
    b = u(ks[2], (L, 4, 1, R), bound) + u(ks[3], (L, 4, 1, R), bound)  # b_ih + b_hh
    # Regressor
    rw1 = u(ks[4], (R, R), bound)
    rb1 = u(ks[5], (1, R), bound)
    rw2 = u(ks[6], (R, semantic), bound)
    rb2 = u(ks[7], (1, semantic), bound)
    # Classifier
    cw1 = u(ks[8], (R, R), bound)
    cb1 = u(ks[9], (1, R), bound)
    cw2 = u(ks[10], (R, 1), bound)
    cb2 = jnp.zeros((1, 1), jnp.float32)
    cw3 = u(ks[11], (T, classes), 1.0 / jnp.sqrt(T))
    cb3 = jnp.zeros((1, classes), jnp.float32)
    return (wih, whh, b, rw1, rb1, rw2, rb2, cw1, cb1, cw2, cb2, cw3, cb3)


if __name__ == "__main__":
    # Small synthetic config (args): regions=32, lstm_layers=2, time_points=8,
    # semantic=4, classes=3, task='all'.
    S, N, R = 2, 8, 32          # dim0 (LSTM seq), dim1 (= time_points), regions
    L, SEM, CLS = 2, 4, 3

    key = jax.random.PRNGKey(0)
    kx, kp = jax.random.split(key)
    x = jax.random.normal(kx, (S, N, R), jnp.float32)
    params = make_params(kp, regions=R, lstm_layers=L, time_points=N,
                         semantic=SEM, classes=CLS)
    kparams = pack_params_for_kernel(params)

    logits2, logits1 = lstm_forward(x, kparams, semantic=SEM, classes=CLS)
    logits2 = jax.block_until_ready(logits2)
    logits1 = jax.block_until_ready(logits1)

    ref2, ref1 = reference_forward(x, params)
    assert logits1.shape == (S, N, SEM) and logits2.shape == (S, 1, CLS)
    # Tolerance accounts for bf16 matmul inputs (f32 accumulation) in the kernel.
    if not (jnp.allclose(logits1, ref1, rtol=2e-2, atol=2e-2)
            and jnp.allclose(logits2, ref2, rtol=2e-2, atol=2e-2)):
        d1 = float(jnp.max(jnp.abs(logits1 - ref1)))
        d2 = float(jnp.max(jnp.abs(logits2 - ref2)))
        raise AssertionError(f"mismatch vs reference: reg={d1} cla={d2}")

    print("KERNEL_OK")
</pallas_src>

<mosaic_0001>
module attributes {stable_mosaic.version = 11 : i64} {
  func.func @_lstm_heads_kernel(%arg0: memref<16x32xf32, #tpu.memory_space<vmem>>, %arg1: memref<2x64x128xbf16, #tpu.memory_space<vmem>>, %arg2: memref<32x68xbf16, #tpu.memory_space<vmem>>, %arg3: memref<8x3xbf16, #tpu.memory_space<vmem>>, %arg4: memref<1x360xf32, #tpu.memory_space<vmem>>, %arg5: memref<16x4xf32, #tpu.memory_space<vmem>>, %arg6: memref<2x3xf32, #tpu.memory_space<vmem>>, %arg7: memref<16x32xbf16, #tpu.memory_space<vmem>>, %arg8: memref<16x128xf32, #tpu.memory_space<vmem>>) attributes {dimension_semantics = [], scalar_prefetch = 0 : i64, scratch_operands = 2 : i64, tpu.core_type = #tpu.core_type<tc>} {
    %c0 = arith.constant 0 : index
    %c0_0 = arith.constant 0 : index
    %c0_1 = arith.constant 0 : index
    %0 = vector.load %arg1[%c0, %c0_0, %c0_1] : memref<2x64x128xbf16, #tpu.memory_space<vmem>>, vector<1x64x128xbf16>
    %1 = vector.shape_cast %0 : vector<1x64x128xbf16> to vector<64x128xbf16>
    %2 = vector.extract_strided_slice %1 {offsets = [0, 0], sizes = [32, 128], strides = [1, 1]} : vector<64x128xbf16> to vector<32x128xbf16>
    %3 = vector.extract_strided_slice %1 {offsets = [32, 0], sizes = [32, 128], strides = [1, 1]} : vector<64x128xbf16> to vector<32x128xbf16>
    %c0_2 = arith.constant 0 : index
    %c0_3 = arith.constant 0 : index
    %4 = vector.load %arg4[%c0_2, %c0_3] : memref<1x360xf32, #tpu.memory_space<vmem>>, vector<1x128xf32>
    %c0_4 = arith.constant 0 : index
    %c0_5 = arith.constant 0 : index
    %5 = vector.load %arg0[%c0_4, %c0_5] : memref<16x32xf32, #tpu.memory_space<vmem>>, vector<16x32xf32>
    %6 = arith.truncf %5 : vector<16x32xf32> to vector<16x32xbf16>
    %cst = arith.constant dense<0.000000e+00> : vector<16x128xf32>
    %7 = tpu.matmul %6, %2, %cst {dimension_numbers = #tpu.dot_dimension_numbers<[1], [0], [0], [1], [0, 0, 1, 1], [], []>} : vector<16x32xbf16>, vector<32x128xbf16>, vector<16x128xf32> -> vector<16x128xf32>
    %8 = vector.broadcast %4 : vector<1x128xf32> to vector<16x128xf32>
    %9 = arith.addf %7, %8 : vector<16x128xf32>
    %c0_6 = arith.constant 0 : index
    %c0_7 = arith.constant 0 : index
    %10 = vector.load %arg8[%c0_6, %c0_7] : memref<16x128xf32, #tpu.memory_space<vmem>>, vector<16x128xf32>
    tpu.vector_store %arg8[%c0_6, %c0_7], %9 {strides = array<i32>} : memref<16x128xf32, #tpu.memory_space<vmem>>, vector<16x128xf32>,
    %cst_8 = arith.constant 0.000000e+00 : bf16
    %11 = vector.broadcast %cst_8 : bf16 to vector<8x32xbf16>
    %cst_9 = arith.constant 0.000000e+00 : f32
    %12 = vector.broadcast %cst_9 : f32 to vector<8x32xf32>
    %c0_10 = arith.constant 0 : index
    %c0_11 = arith.constant 0 : index
    %13 = vector.load %arg8[%c0_10, %c0_11] : memref<16x128xf32, #tpu.memory_space<vmem>>, vector<8x128xf32>
    %cst_12 = arith.constant dense<0.000000e+00> : vector<8x128xf32>
    %14 = tpu.matmul %11, %3, %cst_12 {dimension_numbers = #tpu.dot_dimension_numbers<[1], [0], [0], [1], [0, 0, 1, 1], [], []>} : vector<8x32xbf16>, vector<32x128xbf16>, vector<8x128xf32> -> vector<8x128xf32>
    %15 = arith.addf %13, %14 : vector<8x128xf32>
    %16 = arith.negf %15 : vector<8x128xf32>
    %17 = math.exp %16 : vector<8x128xf32>
    %cst_13 = arith.constant 1.000000e+00 : f32
    %18 = vector.broadcast %cst_13 : f32 to vector<8x128xf32>
    %19 = arith.addf %18, %17 : vector<8x128xf32>
    %20 = arith.divf %18, %19 : vector<8x128xf32>
    %21 = math.tanh %15 : vector<8x128xf32>
    %22 = vector.extract_strided_slice %20 {offsets = [0, 32], sizes = [8, 32], strides = [1, 1]} : vector<8x128xf32> to vector<8x32xf32>
    %23 = arith.mulf %22, %12 : vector<8x32xf32>
    %24 = vector.extract_strided_slice %20 {offsets = [0, 0], sizes = [8, 32], strides = [1, 1]} : vector<8x128xf32> to vector<8x32xf32>
    %25 = vector.extract_strided_slice %21 {offsets = [0, 96], sizes = [8, 32], strides = [1, 1]} : vector<8x128xf32> to vector<8x32xf32>
    %26 = arith.mulf %24, %25 : vector<8x32xf32>
    %27 = arith.addf %23, %26 : vector<8x32xf32>
    %28 = vector.extract_strided_slice %20 {offsets = [0, 64], sizes = [8, 32], strides = [1, 1]} : vector<8x128xf32> to vector<8x32xf32>
    %29 = math.tanh %27 : vector<8x32xf32>
    %30 = arith.mulf %28, %29 : vector<8x32xf32>
    %31 = arith.truncf %30 : vector<8x32xf32> to vector<8x32xbf16>
    %c0_14 = arith.constant 0 : index
    %c0_15 = arith.constant 0 : index
    %32 = vector.load %arg7[%c0_14, %c0_15] : memref<16x32xbf16, #tpu.memory_space<vmem>>, vector<8x32xbf16>
    tpu.vector_store %arg7[%c0_14, %c0_15], %31 {strides = array<i32>} : memref<16x32xbf16, #tpu.memory_space<vmem>>, vector<8x32xbf16>,
    %c8 = arith.constant 8 : index
    %c0_16 = arith.constant 0 : index
    %33 = vector.load %arg8[%c8, %c0_16] : memref<16x128xf32, #tpu.memory_space<vmem>>, vector<8x128xf32>
    %cst_17 = arith.constant dense<0.000000e+00> : vector<8x128xf32>
    %34 = tpu.matmul %31, %3, %cst_17 {dimension_numbers = #tpu.dot_dimension_numbers<[1], [0], [0], [1], [0, 0, 1, 1], [], []>} : vector<8x32xbf16>, vector<32x128xbf16>, vector<8x128xf32> -> vector<8x128xf32>
    %35 = arith.addf %33, %34 : vector<8x128xf32>
    %36 = arith.negf %35 : vector<8x128xf32>
    %37 = math.exp %36 : vector<8x128xf32>
    %cst_18 = arith.constant 1.000000e+00 : f32
    %38 = vector.broadcast %cst_18 : f32 to vector<8x128xf32>
    %39 = arith.addf %38, %37 : vector<8x128xf32>
    %40 = arith.divf %38, %39 : vector<8x128xf32>
    %41 = math.tanh %35 : vector<8x128xf32>
    %42 = vector.extract_strided_slice %40 {offsets = [0, 32], sizes = [8, 32], strides = [1, 1]} : vector<8x128xf32> to vector<8x32xf32>
    %43 = arith.mulf %42, %27 : vector<8x32xf32>
    %44 = vector.extract_strided_slice %40 {offsets = [0, 0], sizes = [8, 32], strides = [1, 1]} : vector<8x128xf32> to vector<8x32xf32>
    %45 = vector.extract_strided_slice %41 {offsets = [0, 96], sizes = [8, 32], strides = [1, 1]} : vector<8x128xf32> to vector<8x32xf32>
    %46 = arith.mulf %44, %45 : vector<8x32xf32>
    %47 = arith.addf %43, %46 : vector<8x32xf32>
    %48 = vector.extract_strided_slice %40 {offsets = [0, 64], sizes = [8, 32], strides = [1, 1]} : vector<8x128xf32> to vector<8x32xf32>
    %49 = math.tanh %47 : vector<8x32xf32>
    %50 = arith.mulf %48, %49 : vector<8x32xf32>
    %51 = arith.truncf %50 : vector<8x32xf32> to vector<8x32xbf16>
    %c8_19 = arith.constant 8 : index
    %c0_20 = arith.constant 0 : index
    %52 = vector.load %arg7[%c8_19, %c0_20] : memref<16x32xbf16, #tpu.memory_space<vmem>>, vector<8x32xbf16>
    tpu.vector_store %arg7[%c8_19, %c0_20], %51 {strides = array<i32>} : memref<16x32xbf16, #tpu.memory_space<vmem>>, vector<8x32xbf16>,
    %c1 = arith.constant 1 : index
    %c0_21 = arith.constant 0 : index
    %c0_22 = arith.constant 0 : index
    %53 = vector.load %arg1[%c1, %c0_21, %c0_22] : memref<2x64x128xbf16, #tpu.memory_space<vmem>>, vector<1x64x128xbf16>
    %54 = vector.shape_cast %53 : vector<1x64x128xbf16> to vector<64x128xbf16>
    %55 = vector.extract_strided_slice %54 {offsets = [0, 0], sizes = [32, 128], strides = [1, 1]} : vector<64x128xbf16> to vector<32x128xbf16>
    %56 = vector.extract_strided_slice %54 {offsets = [32, 0], sizes = [32, 128], strides = [1, 1]} : vector<64x128xbf16> to vector<32x128xbf16>
    %c0_23 = arith.constant 0 : index
    %c128 = arith.constant 128 : index
    %57 = vector.load %arg4[%c0_23, %c128] : memref<1x360xf32, #tpu.memory_space<vmem>>, vector<1x128xf32>
    %c0_24 = arith.constant 0 : index
    %c0_25 = arith.constant 0 : index
    %58 = vector.load %arg7[%c0_24, %c0_25] : memref<16x32xbf16, #tpu.memory_space<vmem>>, vector<16x32xbf16>
    %cst_26 = arith.constant dense<0.000000e+00> : vector<16x128xf32>
    %59 = tpu.matmul %58, %55, %cst_26 {dimension_numbers = #tpu.dot_dimension_numbers<[1], [0], [0], [1], [0, 0, 1, 1], [], []>} : vector<16x32xbf16>, vector<32x128xbf16>, vector<16x128xf32> -> vector<16x128xf32>
    %60 = vector.broadcast %57 : vector<1x128xf32> to vector<16x128xf32>
    %61 = arith.addf %59, %60 : vector<16x128xf32>
    %c0_27 = arith.constant 0 : index
    %c0_28 = arith.constant 0 : index
    %62 = vector.load %arg8[%c0_27, %c0_28] : memref<16x128xf32, #tpu.memory_space<vmem>>, vector<16x128xf32>
    tpu.vector_store %arg8[%c0_27, %c0_28], %61 {strides = array<i32>} : memref<16x128xf32, #tpu.memory_space<vmem>>, vector<16x128xf32>,
    %cst_29 = arith.constant 0.000000e+00 : bf16
    %63 = vector.broadcast %cst_29 : bf16 to vector<8x32xbf16>
    %cst_30 = arith.constant 0.000000e+00 : f32
    %64 = vector.broadcast %cst_30 : f32 to vector<8x32xf32>
    %c0_31 = arith.constant 0 : index
    %c0_32 = arith.constant 0 : index
    %65 = vector.load %arg8[%c0_31, %c0_32] : memref<16x128xf32, #tpu.memory_space<vmem>>, vector<8x128xf32>
    %cst_33 = arith.constant dense<0.000000e+00> : vector<8x128xf32>
    %66 = tpu.matmul %63, %56, %cst_33 {dimension_numbers = #tpu.dot_dimension_numbers<[1], [0], [0], [1], [0, 0, 1, 1], [], []>} : vector<8x32xbf16>, vector<32x128xbf16>, vector<8x128xf32> -> vector<8x128xf32>
    %67 = arith.addf %65, %66 : vector<8x128xf32>
    %68 = arith.negf %67 : vector<8x128xf32>
    %69 = math.exp %68 : vector<8x128xf32>
    %cst_34 = arith.constant 1.000000e+00 : f32
    %70 = vector.broadcast %cst_34 : f32 to vector<8x128xf32>
    %71 = arith.addf %70, %69 : vector<8x128xf32>
    %72 = arith.divf %70, %71 : vector<8x128xf32>
    %73 = math.tanh %67 : vector<8x128xf32>
    %74 = vector.extract_strided_slice %72 {offsets = [0, 32], sizes = [8, 32], strides = [1, 1]} : vector<8x128xf32> to vector<8x32xf32>
    %75 = arith.mulf %74, %64 : vector<8x32xf32>
    %76 = vector.extract_strided_slice %72 {offsets = [0, 0], sizes = [8, 32], strides = [1, 1]} : vector<8x128xf32> to vector<8x32xf32>
    %77 = vector.extract_strided_slice %73 {offsets = [0, 96], sizes = [8, 32], strides = [1, 1]} : vector<8x128xf32> to vector<8x32xf32>
    %78 = arith.mulf %76, %77 : vector<8x32xf32>
    %79 = arith.addf %75, %78 : vector<8x32xf32>
    %80 = vector.extract_strided_slice %72 {offsets = [0, 64], sizes = [8, 32], strides = [1, 1]} : vector<8x128xf32> to vector<8x32xf32>
    %81 = math.tanh %79 : vector<8x32xf32>
    %82 = arith.mulf %80, %81 : vector<8x32xf32>
    %83 = arith.truncf %82 : vector<8x32xf32> to vector<8x32xbf16>
    %c0_35 = arith.constant 0 : index
    %c0_36 = arith.constant 0 : index
    %84 = vector.load %arg7[%c0_35, %c0_36] : memref<16x32xbf16, #tpu.memory_space<vmem>>, vector<8x32xbf16>
    tpu.vector_store %arg7[%c0_35, %c0_36], %83 {strides = array<i32>} : memref<16x32xbf16, #tpu.memory_space<vmem>>, vector<8x32xbf16>,
    %c8_37 = arith.constant 8 : index
    %c0_38 = arith.constant 0 : index
    %85 = vector.load %arg8[%c8_37, %c0_38] : memref<16x128xf32, #tpu.memory_space<vmem>>, vector<8x128xf32>
    %cst_39 = arith.constant dense<0.000000e+00> : vector<8x128xf32>
    %86 = tpu.matmul %83, %56, %cst_39 {dimension_numbers = #tpu.dot_dimension_numbers<[1], [0], [0], [1], [0, 0, 1, 1], [], []>} : vector<8x32xbf16>, vector<32x128xbf16>, vector<8x128xf32> -> vector<8x128xf32>
    %87 = arith.addf %85, %86 : vector<8x128xf32>
    %88 = arith.negf %87 : vector<8x128xf32>
    %89 = math.exp %88 : vector<8x128xf32>
    %cst_40 = arith.constant 1.000000e+00 : f32
    %90 = vector.broadcast %cst_40 : f32 to vector<8x128xf32>
    %91 = arith.addf %90, %89 : vector<8x128xf32>
    %92 = arith.divf %90, %91 : vector<8x128xf32>
    %93 = math.tanh %87 : vector<8x128xf32>
    %94 = vector.extract_strided_slice %92 {offsets = [0, 32], sizes = [8, 32], strides = [1, 1]} : vector<8x128xf32> to vector<8x32xf32>
    %95 = arith.mulf %94, %79 : vector<8x32xf32>
    %96 = vector.extract_strided_slice %92 {offsets = [0, 0], sizes = [8, 32], strides = [1, 1]} : vector<8x128xf32> to vector<8x32xf32>
    %97 = vector.extract_strided_slice %93 {offsets = [0, 96], sizes = [8, 32], strides = [1, 1]} : vector<8x128xf32> to vector<8x32xf32>
    %98 = arith.mulf %96, %97 : vector<8x32xf32>
    %99 = arith.addf %95, %98 : vector<8x32xf32>
    %100 = vector.extract_strided_slice %92 {offsets = [0, 64], sizes = [8, 32], strides = [1, 1]} : vector<8x128xf32> to vector<8x32xf32>
    %101 = math.tanh %99 : vector<8x32xf32>
    %102 = arith.mulf %100, %101 : vector<8x32xf32>
    %103 = arith.truncf %102 : vector<8x32xf32> to vector<8x32xbf16>
    %c8_41 = arith.constant 8 : index
    %c0_42 = arith.constant 0 : index
    %104 = vector.load %arg7[%c8_41, %c0_42] : memref<16x32xbf16, #tpu.memory_space<vmem>>, vector<8x32xbf16>
    tpu.vector_store %arg7[%c8_41, %c0_42], %103 {strides = array<i32>} : memref<16x32xbf16, #tpu.memory_space<vmem>>, vector<8x32xbf16>,
    %c0_43 = arith.constant 0 : index
    %c0_44 = arith.constant 0 : index
    %105 = vector.load %arg7[%c0_43, %c0_44] : memref<16x32xbf16, #tpu.memory_space<vmem>>, vector<16x32xbf16>
    %c0_45 = arith.constant 0 : index
    %c0_46 = arith.constant 0 : index
    %106 = vector.load %arg2[%c0_45, %c0_46] : memref<32x68xbf16, #tpu.memory_space<vmem>>, vector<32x68xbf16>
    %c0_47 = arith.constant 0 : index
    %c256 = arith.constant 256 : index
    %107 = vector.load %arg4[%c0_47, %c256] : memref<1x360xf32, #tpu.memory_space<vmem>>, vector<1x64xf32>
    %108 = vector.extract_strided_slice %106 {offsets = [0, 0], sizes = [32, 64], strides = [1, 1]} : vector<32x68xbf16> to vector<32x64xbf16>
    %cst_48 = arith.constant dense<0.000000e+00> : vector<16x64xf32>
    %109 = tpu.matmul %105, %108, %cst_48 {dimension_numbers = #tpu.dot_dimension_numbers<[1], [0], [0], [1], [0, 0, 1, 1], [], []>} : vector<16x32xbf16>, vector<32x64xbf16>, vector<16x64xf32> -> vector<16x64xf32>
    %110 = vector.broadcast %107 : vector<1x64xf32> to vector<16x64xf32>
    %111 = arith.addf %109, %110 : vector<16x64xf32>
    %cst_49 = arith.constant 0.000000e+00 : f32
    %112 = vector.broadcast %cst_49 : f32 to vector<16x64xf32>
    %113 = arith.maximumf %111, %112 : vector<16x64xf32>
    %c0_50 = arith.constant 0 : index
    %c320 = arith.constant 320 : index
    %114 = vector.load %arg4[%c0_50, %c320] : memref<1x360xf32, #tpu.memory_space<vmem>>, vector<1x4xf32>
    %115 = vector.extract_strided_slice %113 {offsets = [0, 0], sizes = [16, 32], strides = [1, 1]} : vector<16x64xf32> to vector<16x32xf32>
    %116 = arith.truncf %115 : vector<16x32xf32> to vector<16x32xbf16>
    %117 = vector.extract_strided_slice %106 {offsets = [0, 64], sizes = [32, 4], strides = [1, 1]} : vector<32x68xbf16> to vector<32x4xbf16>
    %cst_51 = arith.constant dense<0.000000e+00> : vector<16x4xf32>
    %118 = tpu.matmul %116, %117, %cst_51 {dimension_numbers = #tpu.dot_dimension_numbers<[1], [0], [0], [1], [0, 0, 1, 1], [], []>} : vector<16x32xbf16>, vector<32x4xbf16>, vector<16x4xf32> -> vector<16x4xf32>
    %119 = vector.broadcast %114 : vector<1x4xf32> to vector<16x4xf32>
    %120 = arith.addf %118, %119 : vector<16x4xf32>
    %c0_52 = arith.constant 0 : index
    %c0_53 = arith.constant 0 : index
    %121 = vector.load %arg5[%c0_52, %c0_53] : memref<16x4xf32, #tpu.memory_space<vmem>>, vector<16x4xf32>
    tpu.vector_store %arg5[%c0_52, %c0_53], %120 {strides = array<i32>} : memref<16x4xf32, #tpu.memory_space<vmem>>, vector<16x4xf32>,
    %c0_54 = arith.constant 0 : index
    %c324 = arith.constant 324 : index
    %122 = vector.load %arg4[%c0_54, %c324] : memref<1x360xf32, #tpu.memory_space<vmem>>, vector<1x32xf32>
    %c0_55 = arith.constant 0 : index
    %c356 = arith.constant 356 : index
    %123 = vector.load %arg4[%c0_55, %c356] : memref<1x360xf32, #tpu.memory_space<vmem>>, vector<1x1xf32>
    %124 = vector.extract_strided_slice %113 {offsets = [0, 32], sizes = [16, 32], strides = [1, 1]} : vector<16x64xf32> to vector<16x32xf32>
    %125 = vector.shape_cast %124 : vector<16x32xf32> to vector<2x8x32xf32>
    %126 = vector.shape_cast %122 : vector<1x32xf32> to vector<1x1x32xf32>
    %127 = vector.broadcast %126 : vector<1x1x32xf32> to vector<2x8x32xf32>
    %128 = arith.mulf %125, %127 : vector<2x8x32xf32>
    %cst_56 = arith.constant dense<0.000000e+00> : vector<2x8xf32>
    %129 = vector.multi_reduction <add>, %128, %cst_56 [2] : vector<2x8x32xf32> to vector<2x8xf32>
    %130 = vector.broadcast %123 : vector<1x1xf32> to vector<2x8xf32>
    %131 = arith.addf %129, %130 : vector<2x8xf32>
    %c0_57 = arith.constant 0 : index
    %c357 = arith.constant 357 : index
    %132 = vector.load %arg4[%c0_57, %c357] : memref<1x360xf32, #tpu.memory_space<vmem>>, vector<1x3xf32>
    %133 = arith.truncf %131 : vector<2x8xf32> to vector<2x8xbf16>
    %c0_58 = arith.constant 0 : index
    %c0_59 = arith.constant 0 : index
    %134 = vector.load %arg3[%c0_58, %c0_59] : memref<8x3xbf16, #tpu.memory_space<vmem>>, vector<8x3xbf16>
    %cst_60 = arith.constant dense<0.000000e+00> : vector<2x3xf32>
    %135 = tpu.matmul %133, %134, %cst_60 {dimension_numbers = #tpu.dot_dimension_numbers<[1], [0], [0], [1], [0, 0, 1, 1], [], []>} : vector<2x8xbf16>, vector<8x3xbf16>, vector<2x3xf32> -> vector<2x3xf32>
    %136 = vector.broadcast %132 : vector<1x3xf32> to vector<2x3xf32>
    %137 = arith.addf %135, %136 : vector<2x3xf32>
    %cst_61 = arith.constant dense<0xFF800000> : vector<3xf32>
    %138 = vector.multi_reduction <maximumf>, %137, %cst_61 [0] : vector<2x3xf32> to vector<3xf32>
    %139 = vector.shape_cast %138 : vector<3xf32> to vector<1x3xf32>
    %140 = vector.broadcast %139 : vector<1x3xf32> to vector<2x3xf32>
    %141 = arith.subf %137, %140 : vector<2x3xf32>
    %142 = math.exp %141 : vector<2x3xf32>
    %cst_62 = arith.constant dense<0.000000e+00> : vector<3xf32>
    %143 = vector.multi_reduction <add>, %142, %cst_62 [0] : vector<2x3xf32> to vector<3xf32>
    %144 = vector.shape_cast %143 : vector<3xf32> to vector<1x3xf32>
    %145 = vector.broadcast %144 : vector<1x3xf32> to vector<2x3xf32>
    %146 = arith.divf %142, %145 : vector<2x3xf32>
    %c0_63 = arith.constant 0 : index
    %c0_64 = arith.constant 0 : index
    %147 = vector.load %arg6[%c0_63, %c0_64] : memref<2x3xf32, #tpu.memory_space<vmem>>, vector<2x3xf32>
    tpu.vector_store %arg6[%c0_63, %c0_64], %146 {strides = array<i32>} : memref<2x3xf32, #tpu.memory_space<vmem>>, vector<2x3xf32>,
    return
  }
}

</mosaic_0001>

<bundles_post_ra>
// kernel: tpu_custom_call.1
= control target key start
LH: loop header
LB: loop body
LE: loop exit
PB: predicated region body
PF: predicated region fallthrough
CT: control target
= control target key end

     0   :  { %12 = vsyncpa [#allocation5], 0  ;;  %s994_s0 = inlined_call_operand.hbm [shape: f32[16,32], index: 0, kind: input, shape index: {}]   ;;  %s995_s1 = inlined_call_operand.hbm [shape: bf16[2,64,128], index: 1, kind: input, shape index: {}]   ;;  %s996_s2 = inlined_call_operand.hbm [shape: bf16[32,68], index: 2, kind: input, shape index: {}]   ;;  %s997_s3 = inlined_call_operand.vmem [shape: bf16[8,3], index: 3, kind: input, shape index: {}]   ;;  %s998_s4 = inlined_call_operand.vmem [shape: f32[1,360], index: 4, kind: input, shape index: {}]   ;;  %s999_s5 = inlined_call_operand.vmem [shape: f32[16,4], index: 5, kind: output, shape index: {0}]   ;;  %s1000_s6 = inlined_call_operand.hbm [shape: f32[2,3], index: 6, kind: output, shape index: {1}]  }
   0x1   :  { %13 = vsyncpa [#allocation8], 0  ;;  %s32_s23 = sshll.u32 %s995_s1, 4  ;;  %s33_s23 = int_to_ptr.hbm [resolvable:$true] %s32_s23 }
   0x2   :  { %14 = vsyncpa [#allocation6], 0  ;;  %s870_s24 = smov [#allocation7]   ;;  %s19_s28 = sshll.u32 %s994_s0, 4  ;;  %s20_s28 = int_to_ptr.hbm [resolvable:$true] %s19_s28 }
   0x3   :  { %s34_s25 = sshll.u32 %s870_s24, 4  ;;  %s871_s29 = smov 64   ;;  %s35_s25 = int_to_ptr.vmem [resolvable:$true] %s34_s25 }
   0x4   :  { %s872_s30 = smov 4   ;;  %s873_s7 = smov [#allocation4]  }
   0x5   :  { %40 = dma.hbm_to_vmem [thread:$0]  %s33_s23, 1024, %s35_s25, [#allocation8], %s871_s29, %s871_s29, %s872_s30  }
   0x6   :  { %s21_s8 = sshll.u32 %s873_s7, 4  ;;  %s874_s9 = smov 128   ;;  %s22_s8 = int_to_ptr.vmem [resolvable:$true] %s21_s8 }
   0x7   :  { %s875_s1 = smov 8   ;;  %s45_s12 = sshll.u32 %s996_s2, 4  ;;  %s46_s12 = int_to_ptr.hbm [resolvable:$true] %s45_s12 }
   0x8   :  { %27 = dma.hbm_to_vmem [thread:$0]  %s20_s28, 256, %s22_s8, [#allocation5], %s874_s9, %s874_s9, %s875_s1  }
   0x9   :  { %s876_s13 = smov [#allocation9]  }
   0xa   :  { %s47_s14 = sshll.u32 %s876_s13, 4  ;;  %s48_s14 = int_to_ptr.vmem [resolvable:$true] %s47_s14 }
   0xb   :  { %53 = dma.hbm_to_vmem [thread:$0]  %s46_s12, 256, %s48_s14, [#allocation8], %s871_s29, %s871_s29, %s872_s30  }
   0xc   :  { %864 = dma.done.wait [#allocation5], 256  }
   0xd   :  { %865 = vsyncadd [#allocation5], 4294967040 }
   0xe   :  { %866 = dma.done.wait [#allocation8], 1280  }
   0xf   :  { %867 = vsyncadd [#allocation8], 4294966016  ;;  %v701_v0 = vld [vmem:[#allocation7 + $0x8] sm:$0xff]  ;;  %v703_v1 = vld [vmem:[#allocation7 + $0x18] sm:$0xff]  ;;  %vm98_vm0 = vcmask 261120   ;;  %v877_v7 = vmov 0  }
  0x10   :  { %v700_v2 = vld [vmem:[#allocation7] sm:$0xff]  ;;  %v702_v3 = vld [vmem:[#allocation7 + $0x10] sm:$0xff]  ;;  %108 = vmatpush.bf16.msra.mxu0 %v701_v0  ;;  %140 = vmatpush.bf16.msra.mxu1 %v703_v1  ;;  %v81_v5 = vld [vmem:[#allocation4 + $0x8] sm:$0xff]  ;;  %s878_s15 = smov 32   ;;  %vm190_vm5 = vcmask 257024   ;;  %s879_s20 = smov 92  }
  0x11   :  { %v80_v4 = vld [vmem:[#allocation4] sm:$0xff]  ;;  %206 = vmatpush.bf16.msra.mxu2 %v703_v1  ;;  %v728_v8 = vld [vmem:[%s998_s4] ss:$0 sm:$0xff]  ;;  %s881_s23 = smov 96   ;;  %s882_s24 = smov 27  }
  0x12   :  { %v82_v6 = vpack.c.bf16 %v81_v5, %v80_v4  ;;  %v707_v5 = vld [vmem:[#allocation7 + $0x38] sm:$0xff]  ;;  %s628_s8 = sshll.u32 %s1000_s6, 4  ;;  %s629_s8 = int_to_ptr.hbm [resolvable:$true] %s628_s8 }
  0x14   :  { %109 = vmatpush.bf16.msra.mxu0 %v700_v2  ;;  %141 = vmatpush.bf16.msra.mxu1 %v702_v3 }
  0x15   :  { %207 = vmatpush.bf16.msra.mxu2 %v702_v3 }
  0x17   :  { %649 = vmatmul.msk.bf16.vlgmr.msra.gmra.mxu0 %vm98_vm0, %v82_v6  ;;  %142 = vmatmul.bf16.vlgmr.msra.gmra.mxu1 %v877_v7  ;;  %v705_v6 = vld [vmem:[#allocation7 + $0x28] sm:$0xff] }
  0x18   :  { %327 = vmatpush.bf16.msrb.mxu0 %v707_v5  ;;  %298 = vmatpush.bf16.msra.mxu3 %v705_v6 }
  0x19   :  { %392 = vmatpush.bf16.msrb.mxu1 %v707_v5  ;;  %v711_v5 = vld [vmem:[#allocation9 + $0x8] sm:$0xff] }
  0x1a   :  { %479 = vmatpush.bf16.msrb.mxu2 %v711_v5 }
  0x94   :  { %v111_v9 = vpop.f32.mrf.mxu0  ;;  %v143_v10 = vpop.f32.mrf.mxu1 }
  0x95   :  { %v112_v11 = vadd.f32 %v728_v8, %v111_v9  ;;  %v706_v9 = vld [vmem:[#allocation7 + $0x30] sm:$0xff] }
  0x96   :  { %328 = vmatpush.bf16.msrb.mxu0 %v706_v9  ;;  %393 = vmatpush.bf16.msrb.mxu1 %v706_v9 }
  0x97   :  { %v147_v12 = vadd.f32 %v143_v10, %v112_v11 }
  0x99   :  { %732 = vtanh.f32 %v147_v12  ;;  %v658_v15 = vmul.f32 -1.442695, %v147_v12  ;;  %329 = vmatmul.bf16.vlgmr.msrb.gmra.mxu0 %v877_v7 }
  0x9b   :  { %734 = vpow2.f32 %v658_v15 }
  0x9c   :  { %v145_v13 = vpop.f32.mrf.mxu1  ;;  %v113_v41 = vpop.f32.mrf.mxu0 }
  0x9d   :  { %v114_v42 = vadd.f32 %v728_v8, %v113_v41  ;;  %v704_v8 = vld [vmem:[#allocation7 + $0x20] sm:$0xff] }
  0x9e   :  { %299 = vmatpush.bf16.msra.mxu3 %v704_v8 }
  0x9f   :  { %v733_v14 = vpop.eup %732 }
  0xa0   :  { %170 = vrot.lane.b32.xlu0 %v733_v14, %s878_s15  ;;  %v729_v14 = vld [vmem:[%s998_s4 + $0x1] ss:$0 sm:$0xff] }
  0xa1   :  { %v735_v16 = vpop.eup %734 }
  0xa2   :  { %v151_v17 = vadd.f32 1.0, %v735_v16 }
  0xa4   :  { %736 = vrcp.f32 %v151_v17  ;;  %v163_v23 = vand.u32 2147483648, %v151_v17  ;;  %vm157_vm2 = vweird.f32 %v151_v17  ;;  %v161_v24 = vand.u32 2147483647, %v151_v17 }
  0xa6   :  { %v164_v26 = vor.u32 1.1754944e-38, %v163_v23  ;;  %vm162_vm4 = vcmp.eq.f32.partialorder %v161_v24, 8.507059e+37 }
  0xaa   :  { %v737_v18 = vpop.eup %736 }
  0xab   :  { %v153_v19 = vmul.f32 %v737_v18, %v151_v17  ;;  %vm158_vm1 = vweird.f32 %v737_v18 }
  0xac   :  { %vm159_vm3 = vmor %vm157_vm2, %vm158_vm1 }
  0xad   :  { %v154_v20 = vsub.f32 1.0, %v153_v19 }
  0xaf   :  { %v155_v21 = vmul.f32 %v737_v18, %v154_v20 }
  0xb1   :  { %v156_v22 = vadd.f32 %v737_v18, %v155_v21 }
  0xb3   :  { %v160_v25 = vsel %vm159_vm3, %v737_v18, %v156_v22  ;;  %vm568_vm3 = vcmask 1043456  }
  0xb4   :  { %v165_v28 = vsel %vm162_vm4, %v164_v26, %v160_v25  ;;  %vm558_vm4 = vcmask 1041409  }
  0xb5   :  { %v168_v30 = vmul.f32 0.0, %v165_v28 }
 0x112   :  { %v171_v27 = vpop.permute.xlu0 %170 }
 0x113   :  { %v173_v29 = vmul.f32 %v171_v27, %v165_v28 }
 0x115   :  { %175 = vrot.lane.b32.xlu0 %v173_v29, %s878_s15 }
 0x116   :  { %v330_v12 = vpop.f32.mrf.mxu0 }
 0x11e   :  { %v332_v13 = vpop.f32.mrf.mxu0 }
 0x187   :  { %v176_v31 = vpop.permute.xlu0 %175 }
 0x188   :  { %v178_v32 = vadd.f32 %v176_v31, %v168_v30 }
 0x18a   :  { %738 = vtanh.f32 %v178_v32 }
 0x190   :  { %v739_v33 = vpop.eup %738 }
 0x191   :  { %181 = vrot.lane.b32.xlu1 %v739_v33, %s878_s15 }
 0x203   :  { %v182_v34 = vpop.permute.xlu1 %181 }
 0x204   :  { %v184_v35 = vmul.f32 %v182_v34, %v165_v28 }
 0x206   :  { %v185_v36 = vpack.c.bf16 %v184_v35, %v184_v35 }
 0x208   :  { %v193_v37 = vunpack.c.l.b16 %v185_v36 }
 0x20a   :  { %v194_v38 = vpack.c.b16 %v193_v37, %v193_v37 }
 0x20c   :  { %195 = vrot.lane.b32.xlu1 %v194_v38, %s871_s29 }
 0x214   :  { %187 = vrot.lane.b32.xlu1 %v185_v36, %s871_s29 }
 0x27e   :  { %v196_v39 = vpop.permute.xlu1 %195 }
 0x27f   :  { %659 = vmatmul.msk.bf16.vlgmr.msra.gmra.mxu2 %vm98_vm0, %v196_v39 }
 0x286   :  { %v188_v40 = vpop.permute.xlu1 %187 }
 0x287   :  { %191 = vst.msk [vmem:[#allocation2] sm:$0xf] %vm190_vm5, %v188_v40 }
 0x302   :  { %v209_v43 = vpop.f32.mrf.mxu2 }
 0x303   :  { %v213_v44 = vadd.f32 %v209_v43, %v114_v42 }
 0x305   :  { %740 = vtanh.f32 %v213_v44  ;;  %v660_v47 = vmul.f32 -1.442695, %v213_v44 }
 0x307   :  { %742 = vpow2.f32 %v660_v47 }
 0x30a   :  { %v211_v45 = vpop.f32.mrf.mxu2 }
 0x30b   :  { %v741_v46 = vpop.eup %740 }
 0x30c   :  { %236 = vrot.lane.b32.xlu2 %v741_v46, %s878_s15 }
 0x30d   :  { %v743_v48 = vpop.eup %742 }
 0x30e   :  { %v217_v49 = vadd.f32 1.0, %v743_v48 }
 0x310   :  { %744 = vrcp.f32 %v217_v49  ;;  %v229_v55 = vand.u32 2147483648, %v217_v49  ;;  %vm223_vm7 = vweird.f32 %v217_v49  ;;  %v227_v56 = vand.u32 2147483647, %v217_v49 }
 0x312   :  { %v230_v58 = vor.u32 1.1754944e-38, %v229_v55  ;;  %vm228_vm9 = vcmp.eq.f32.partialorder %v227_v56, 8.507059e+37 }
 0x316   :  { %v745_v50 = vpop.eup %744 }
 0x317   :  { %v219_v51 = vmul.f32 %v745_v50, %v217_v49  ;;  %vm224_vm6 = vweird.f32 %v745_v50 }
 0x318   :  { %vm225_vm8 = vmor %vm223_vm7, %vm224_vm6  ;;  %vm585_vm6 = vcmask 17408  }
 0x319   :  { %v220_v52 = vsub.f32 1.0, %v219_v51 }
 0x31b   :  { %v221_v53 = vmul.f32 %v745_v50, %v220_v52 }
 0x31d   :  { %v222_v54 = vadd.f32 %v745_v50, %v221_v53 }
 0x31f   :  { %v226_v57 = vsel %vm225_vm8, %v745_v50, %v222_v54 }
 0x320   :  { %v231_v60 = vsel %vm228_vm9, %v230_v58, %v226_v57 }
 0x321   :  { %v234_v62 = vmul.f32 %v231_v60, %v178_v32 }
 0x366   :  { %v237_v59 = vpop.permute.xlu2 %236 }
 0x367   :  { %v239_v61 = vmul.f32 %v237_v59, %v231_v60 }
 0x369   :  { %241 = vrot.lane.b32.xlu2 %v239_v61, %s878_s15 }
 0x3c3   :  { %v242_v63 = vpop.permute.xlu2 %241 }
 0x3c4   :  { %v244_v0 = vadd.f32 %v242_v63, %v234_v62 }
 0x3c6   :  { %746 = vtanh.f32 %v244_v0 }
 0x3cc   :  { %v747_v1 = vpop.eup %746 }
 0x3cd   :  { %247 = vrot.lane.b32.xlu0 %v747_v1, %s878_s15 }
 0x43f   :  { %v248_v2 = vpop.permute.xlu0 %247 }
 0x440   :  { %v250_v3 = vmul.f32 %v248_v2, %v231_v60 }
 0x442   :  { %v251_v4 = vpack.c.bf16 %v250_v3, %v250_v3 }
 0x444   :  { %253 = vrot.lane.b32.xlu2 %v251_v4, %s871_s29 }
 0x49e   :  { %v254_v10 = vpop.permute.xlu2 %253 }
 0x49f   :  { %256 = vst.msk [vmem:[#allocation2 + $0x4] sm:$0xf] %vm190_vm5, %v254_v10  ;;  %v710_v10 = vld [vmem:[#allocation9] sm:$0xff] }
 0x4a0   :  { %480 = vmatpush.bf16.msrb.mxu2 %v710_v10 }
 0x4a6   :  { %v708_v11 = vld [vmem:[#allocation2] sm:$0xff] }
 0x4a7   :  { %673 = vmatmul.msk.bf16.vlgmr.msra.gmra.mxu3 %vm98_vm0, %v708_v11  ;;  %v730_v11 = vld [vmem:[%s998_s4 + $0x2] ss:$0 sm:$0xff] }
 0x52a   :  { %v301_v15 = vpop.f32.mrf.mxu3 }
 0x52b   :  { %v302_v16 = vadd.f32 %v729_v14, %v301_v15  ;;  %v731_v15 = vld [vmem:[%s998_s4 + $0x2] ss:$0 sm:$0xff] }
 0x52d   :  { %v334_v17 = vadd.f32 %v330_v12, %v302_v16 }
 0x52f   :  { %748 = vtanh.f32 %v334_v17  ;;  %v682_v7 = vmul.f32 -1.442695, %v334_v17 }
 0x531   :  { %750 = vpow2.f32 %v682_v7 }
 0x532   :  { %v303_v43 = vpop.f32.mrf.mxu3 }
 0x533   :  { %v304_v44 = vadd.f32 %v729_v14, %v303_v43  ;;  %v880_v14 = vmov 100  }
 0x534   :  { %726 = vset.pattern.permute.xlu2 %v880_v14  ;;  %727 = vset.pattern.permute.xlu0 %v880_v14 }
 0x535   :  { %v749_v18 = vpop.eup %748 }
 0x536   :  { %357 = vrot.lane.b32.xlu0 %v749_v18, %s878_s15 }
 0x537   :  { %v751_v19 = vpop.eup %750 }
 0x538   :  { %v338_v20 = vadd.f32 1.0, %v751_v19 }
 0x53a   :  { %752 = vrcp.f32 %v338_v20  ;;  %v350_v26 = vand.u32 2147483648, %v338_v20  ;;  %vm344_vm11 = vweird.f32 %v338_v20  ;;  %v348_v27 = vand.u32 2147483647, %v338_v20 }
 0x53c   :  { %v351_v29 = vor.u32 1.1754944e-38, %v350_v26  ;;  %vm349_vm13 = vcmp.eq.f32.partialorder %v348_v27, 8.507059e+37 }
 0x540   :  { %v753_v21 = vpop.eup %752 }
 0x541   :  { %v340_v22 = vmul.f32 %v753_v21, %v338_v20  ;;  %vm345_vm10 = vweird.f32 %v753_v21 }
 0x542   :  { %vm346_vm12 = vmor %vm344_vm11, %vm345_vm10 }
 0x543   :  { %v341_v23 = vsub.f32 1.0, %v340_v22 }
 0x545   :  { %v342_v24 = vmul.f32 %v753_v21, %v341_v23 }
 0x547   :  { %v343_v25 = vadd.f32 %v753_v21, %v342_v24 }
 0x549   :  { %v347_v28 = vsel %vm346_vm12, %v753_v21, %v343_v25 }
 0x54a   :  { %v352_v31 = vsel %vm349_vm13, %v351_v29, %v347_v28 }
 0x54b   :  { %v355_v33 = vmul.f32 0.0, %v352_v31 }
 0x5a8   :  { %v358_v30 = vpop.permute.xlu0 %357 }
 0x5a9   :  { %v360_v32 = vmul.f32 %v358_v30, %v352_v31 }
 0x5ab   :  { %362 = vrot.lane.b32.xlu1 %v360_v32, %s878_s15  ;;  %v549_v32 = vld [vmem:[%s997_s3] sm:$0xf] }
 0x61d   :  { %v363_v34 = vpop.permute.xlu1 %362 }
 0x61e   :  { %v365_v35 = vadd.f32 %v363_v34, %v355_v33  ;;  %v570_v33 = vsel %vm568_vm3, %v549_v32, 0 }
 0x61f   :  { %579 = vmatpush.bf16.msra.mxu0 %v570_v33 }
 0x620   :  { %754 = vtanh.f32 %v365_v35 }
 0x626   :  { %v755_v36 = vpop.eup %754 }
 0x627   :  { %368 = vrot.lane.b32.xlu2 %v755_v36, %s878_s15  ;;  %v554_v36 = vlaneseq }
 0x681   :  { %v369_v37 = vpop.permute.xlu2 %368 }
 0x682   :  { %v371_v38 = vmul.f32 %v369_v37, %v352_v31 }
 0x684   :  { %v372_v39 = vpack.c.bf16 %v371_v38, %v371_v38 }
 0x686   :  { %v379_v40 = vunpack.c.l.b16 %v372_v39 }
 0x688   :  { %v380_v41 = vpack.c.b16 %v379_v40, %v379_v40  ;;  %v555_v40 = vand.u32 127, %v554_v36 }
 0x68a   :  { %381 = vrot.lane.b32.xlu0 %v380_v41, %s871_s29 }
 0x6fc   :  { %v382_v42 = vpop.permute.xlu0 %381 }
 0x6fd   :  { %683 = vmatmul.msk.bf16.vlgmr.msrb.gmra.mxu1 %vm98_vm0, %v382_v42 }
 0x77a   :  { %v395_v45 = vpop.f32.mrf.mxu1 }
 0x77b   :  { %v399_v46 = vadd.f32 %v395_v45, %v304_v44 }
 0x77d   :  { %756 = vtanh.f32 %v399_v46  ;;  %v684_v49 = vmul.f32 -1.442695, %v399_v46 }
 0x77f   :  { %758 = vpow2.f32 %v684_v49 }
 0x782   :  { %v397_v47 = vpop.f32.mrf.mxu1 }
 0x783   :  { %v757_v48 = vpop.eup %756 }
 0x784   :  { %422 = vrot.lane.b32.xlu1 %v757_v48, %s878_s15 }
 0x785   :  { %v759_v50 = vpop.eup %758 }
 0x786   :  { %v403_v51 = vadd.f32 1.0, %v759_v50 }
 0x788   :  { %760 = vrcp.f32 %v403_v51  ;;  %v415_v57 = vand.u32 2147483648, %v403_v51  ;;  %vm409_vm15 = vweird.f32 %v403_v51  ;;  %v413_v58 = vand.u32 2147483647, %v403_v51 }
 0x78a   :  { %v416_v60 = vor.u32 1.1754944e-38, %v415_v57  ;;  %vm414_vm2 = vcmp.eq.f32.partialorder %v413_v58, 8.507059e+37 }
 0x78c   :  { %374 = vrot.lane.b32.xlu1 %v372_v39, %s871_s29 }
 0x78e   :  { %v761_v52 = vpop.eup %760 }
 0x78f   :  { %v405_v53 = vmul.f32 %v761_v52, %v403_v51  ;;  %vm410_vm14 = vweird.f32 %v761_v52 }
 0x790   :  { %vm411_vm1 = vmor %vm409_vm15, %vm410_vm14 }
 0x791   :  { %v406_v54 = vsub.f32 1.0, %v405_v53 }
 0x793   :  { %v407_v55 = vmul.f32 %v761_v52, %v406_v54 }
 0x795   :  { %v408_v56 = vadd.f32 %v761_v52, %v407_v55 }
 0x797   :  { %v412_v59 = vsel %vm411_vm1, %v761_v52, %v408_v56 }
 0x798   :  { %v417_v62 = vsel %vm414_vm2, %v416_v60, %v412_v59 }
 0x799   :  { %v420_v1 = vmul.f32 %v417_v62, %v365_v35 }
 0x7f6   :  { %v423_v61 = vpop.permute.xlu1 %422 }
 0x7f7   :  { %v425_v63 = vmul.f32 %v423_v61, %v417_v62 }
 0x7f9   :  { %427 = vrot.lane.b32.xlu2 %v425_v63, %s878_s15 }
 0x7fe   :  { %v375_v0 = vpop.permute.xlu1 %374 }
 0x7ff   :  { %377 = vst.msk [vmem:[#allocation2] sm:$0xf] %vm190_vm5, %v375_v0 }
 0x853   :  { %v428_v2 = vpop.permute.xlu2 %427 }
 0x854   :  { %v430_v3 = vadd.f32 %v428_v2, %v420_v1 }
 0x856   :  { %762 = vtanh.f32 %v430_v3 }
 0x85c   :  { %v763_v4 = vpop.eup %762 }
 0x85d   :  { %433 = vrot.lane.b32.xlu0 %v763_v4, %s878_s15 }
 0x865   :  { %522 = vrot.lane.b32.xlu0 %v730_v11, %s879_s20 }
 0x8cf   :  { %v434_v6 = vpop.permute.xlu0 %433 }
 0x8d0   :  { %v436_v8 = vmul.f32 %v434_v6, %v417_v62 }
 0x8d2   :  { %v437_v9 = vpack.c.bf16 %v436_v8, %v436_v8 }
 0x8d4   :  { %439 = vrot.lane.b32.xlu2 %v437_v9, %s871_s29 }
 0x8d7   :  { %v523_v18 = vpop.permute.xlu0 %522 }
 0x92e   :  { %v440_v12 = vpop.permute.xlu2 %439 }
 0x92f   :  { %442 = vst.msk [vmem:[#allocation2 + $0x4] sm:$0xf] %vm190_vm5, %v440_v12  ;;  %vm516_vm5 = vcmask 31744  }
 0x936   :  { %v709_v13 = vld [vmem:[#allocation2] sm:$0xff] }
 0x937   :  { %697 = vmatmul.msk.bf16.vlgmr.msrb.gmra.mxu2 %vm98_vm0, %v709_v13 }
 0x9ba   :  { %v482_v16 = vpop.f32.mrf.mxu2 }
 0x9bb   :  { %v483_v17 = vadd.f32 %v731_v15, %v482_v16 }
 0x9bd   :  { %v487_v7 = vmax.f32 %v483_v17, 0.0 }
 0x9bf   :  { %v525_v19 = vmul.f32 %v523_v18, %v487_v7 }
 0x9c1   :  { %529 = vrot.lane.b32.xlu1 %v525_v19, %s881_s23 }
 0x9c2   :  { %v484_v20 = vpop.f32.mrf.mxu2 }
 0x9c3   :  { %v485_v21 = vadd.f32 %v731_v15, %v484_v20 }
 0x9c5   :  { %v488_v22 = vmax.f32 %v485_v21, 0.0 }
 0x9c7   :  { %v489_v23 = vpack.c.bf16 %v488_v22, %v487_v7  ;;  %v526_v24 = vmul.f32 %v523_v18, %v488_v22 }
 0x9c9   :  { %531 = vrot.lane.b32.xlu2 %v526_v24, %s881_s23 }
 0x9d1   :  { %542 = vperm.xlu2 %726, %v730_v11  }
 0x9d9   :  { %492 = vrot.lane.b32.xlu2 %v711_v5, %s871_s29 }
 0x9e1   :  { %490 = vrot.lane.b32.xlu2 %v710_v10, %s871_s29 }
 0x9e9   :  { %561 = vrot.lane.b32.xlu2 %v730_v11, %s882_s24 }
 0x9f1   :  { %496 = vrot.lane.b32.xlu2 %v731_v15, %s871_s29 }
 0xa23   :  { %v532_v25 = vpop.permute.xlu2 %531 }
 0xa24   :  { %v538_v26 = vsel %vm98_vm0, %v532_v25, 0.0 }
 0xa25   :  { %539 = vadd.xlane.f32.xlu1 %v538_v26 }
 0xa2b   :  { %v543_v27 = vpop.permute.xlu2 %542 }
 0xa33   :  { %v493_v28 = vpop.permute.xlu2 %492  ;;  %v530_v29 = vpop.permute.xlu1 %529 }
 0xa34   :  { %v535_v30 = vsel %vm98_vm0, %v530_v29, 0.0  ;;  %508 = vmatpush.bf16.msrb.mxu3 %v493_v28 }
 0xa35   :  { %536 = vadd.xlane.f32.xlu0 %v535_v30 }
 0xa3b   :  { %v491_v31 = vpop.permute.xlu2 %490 }
 0xa3c   :  { %509 = vmatpush.bf16.msrb.mxu3 %v491_v31 }
 0xa3f   :  { %698 = vmatmul.msk.bf16.vlgmr.msrb.gmra.mxu3 %vm98_vm0, %v489_v23  ;;  %vm564_vm0 = vcmask 64512  }
 0xa43   :  { %v562_v48 = vpop.permute.xlu2 %561 }
 0xa4b   :  { %v497_v49 = vpop.permute.xlu2 %496 }
 0xa98   :  { %v540_v34 = vpop.xlane.xlu1 %539 }
 0xa99   :  { %v546_v35 = vadd.f32 %v543_v27, %v540_v34 }
 0xa9b   :  { %v548_v37 = vpack.c.bf16 %v546_v35, %v546_v35 }
 0xa9d   :  { %v553_v41 = vunpack.c.l.b16 %v548_v37 }
 0xa9f   :  { %v557_v44 = vperm.slane %v553_v41, %v555_v40 }
 0xaa8   :  { %v537_v38 = vpop.xlane.xlu0 %536 }
 0xaa9   :  { %v545_v39 = vadd.f32 %v543_v27, %v537_v38 }
 0xaab   :  { %v547_v42 = vpack.c.bf16 %v545_v39, %v545_v39 }
 0xaad   :  { %v552_v43 = vunpack.c.l.b16 %v547_v42 }
 0xaaf   :  { %v556_v45 = vperm.slane %v552_v43, %v555_v40 }
 0xab1   :  { %v559_v46 = vsel %vm558_vm4, %v557_v44, %v556_v45 }
 0xab2   :  { %v560_v47 = vpack.c.b16 %v559_v46, %v559_v46 }
 0xab4   :  { %699 = vmatmul.msk.bf16.vlgmr.msra.gmra.mxu0 %vm564_vm0, %v560_v47 }
 0xac2   :  { %v511_v50 = vpop.f32.mrf.mxu3 }
 0xac3   :  { %v512_v51 = vadd.f32 %v511_v50, %v497_v49 }
 0xac5   :  { %517 = vst.msk [vmem:[%s999_s5] sm:$0xff] %vm516_vm5, %v512_v51 }
 0xaca   :  { %v513_v52 = vpop.f32.mrf.mxu3 }
 0xacb   :  { %v514_v53 = vadd.f32 %v513_v52, %v497_v49 }
 0xacd   :  { %518 = vst.msk [vmem:[%s999_s5 + $0x8] sm:$0xff] %vm516_vm5, %v514_v53  ;;  %s883_s5 = smov [#allocation10]  }
 0xace   :  { %s626_s29 = sshll.u32 %s883_s5, 4  ;;  %s627_s29 = int_to_ptr.vmem [resolvable:$true] %s626_s29 }
 0xb31   :  { %v581_v54 = vpop.f32.mrf.mxu0 }
 0xb32   :  { %v582_v55 = vadd.f32 %v581_v54, %v562_v48 }
 0xb34   :  { %v586_v56 = vsel %vm585_vm6, %v582_v55, -inf }
 0xb35   :  { %v587_v57 = vrot.slane %v586_v56, 4 }
 0xb37   :  { %v588_v58 = vmax.f32 %v586_v56, %v587_v57 }
 0xb39   :  { %v589_v59 = vrot.slane %v588_v58, 2  ;;  %v583_v60 = vpop.f32.mrf.mxu0 }
 0xb3b   :  { %v590_v61 = vmax.f32 %v588_v58, %v589_v59 }
 0xb3d   :  { %v591_v62 = vrot.slane %v590_v61, 1 }
 0xb3f   :  { %v592_v63 = vmax.f32 %v590_v61, %v591_v62 }
 0xb41   :  { %v593_v0 = vsub.f32 %v582_v55, %v592_v63 }
 0xb43   :  { %v594_v1 = vmul.f32 1.442695, %v593_v0 }
 0xb45   :  { %764 = vpow2.f32 %v594_v1 }
 0xb4b   :  { %v765_v2 = vpop.eup %764 }
 0xb4c   :  { %v596_v3 = vsel %vm585_vm6, %v765_v2, 0.0 }
 0xb4d   :  { %v597_v4 = vrot.slane %v596_v3, 4 }
 0xb4f   :  { %v598_v5 = vadd.f32 %v597_v4, %v596_v3 }
 0xb51   :  { %v599_v6 = vrot.slane %v598_v5, 2 }
 0xb53   :  { %v600_v8 = vadd.f32 %v599_v6, %v598_v5 }
 0xb55   :  { %v601_v9 = vrot.slane %v600_v8, 1 }
 0xb57   :  { %v602_v10 = vadd.f32 %v601_v9, %v600_v8 }
 0xb59   :  { %766 = vrcp.f32 %v602_v10  ;;  %v614_v14 = vand.u32 2147483648, %v602_v10  ;;  %v612_v16 = vand.u32 2147483647, %v602_v10  ;;  %vm608_vm8 = vweird.f32 %v602_v10 }
 0xb5b   :  { %v615_v18 = vor.u32 1.1754944e-38, %v614_v14  ;;  %vm613_vm10 = vcmp.eq.f32.partialorder %v612_v16, 8.507059e+37 }
 0xb5f   :  { %v767_v11 = vpop.eup %766 }
 0xb60   :  { %v604_v12 = vmul.f32 %v767_v11, %v602_v10  ;;  %vm609_vm7 = vweird.f32 %v767_v11 }
 0xb61   :  { %vm610_vm9 = vmor %vm608_vm8, %vm609_vm7 }
 0xb62   :  { %v605_v13 = vsub.f32 1.0, %v604_v12 }
 0xb64   :  { %v606_v15 = vmul.f32 %v767_v11, %v605_v13 }
 0xb66   :  { %v607_v17 = vadd.f32 %v767_v11, %v606_v15 }
 0xb68   :  { %v611_v7 = vsel %vm610_vm9, %v767_v11, %v607_v17 }
 0xb69   :  { %v616_v19 = vsel %vm613_vm10, %v615_v18, %v611_v7 }
 0xb6a   :  { %v617_v20 = vmul.f32 %v765_v2, %v616_v19 }
 0xb6c   :  { %618 = vst.msk [vmem:[#allocation10] sm:$0x3] %vm585_vm6, %v617_v20 }
 0xb6d   :  { %631 = dma.vmem_to_hbm [thread:$0]  %s627_s29, 32, %s629_s8, [#allocation6]  }
 0xb6e   :  { %868 = dma.done.wait [#allocation6], 32  }
 0xb6f   :  { %869 = vsyncadd [#allocation6], 4294967264 }
 0xb70   :  { %638 = vsyncpa [#allocation5], 1 }
 0xb71   :  { %639 = vsyncpa [#allocation8], 1 }
 0xb72   :  { %640 = vsyncpa [#allocation6], 1 }

</bundles_post_ra>
